<compile_context>
chip_gen: v7x
topology: tpu7x:2x2x1
jax: 0.10.0
libtpu: 0.0.40
codegen_flags: <defaults>
</compile_context>

<pallas_src>
import math

import jax
import jax.numpy as jnp
import numpy as np
from jax.experimental import pallas as pl
from jax.experimental.pallas import tpu as pltpu


def temporal_attention_kernel(p_ref, h_ref, wp_ref, wa_ref, b_ref,
                              gamma_ref, beta_ref, out_ref, scores_ref):
    p = p_ref[...]                      # (TILE_BN, 2H)      f32
    h = h_ref[...]                      # (TILE_BN, T-1, 2H) f32
    two_h = p.shape[-1]
    inv_sqrt = jnp.float32(1.0 / math.sqrt(two_h))

    # attention_scores = bmm(present, history^T) / sqrt(2H)   -> (TILE_BN, T-1)
    # Per-row dot products (M=1 per batch): VPU broadcast-mul + XLU lane reduce,
    # keeping the MXU free of degenerate-M work.
    scores = jnp.sum(p[:, None, :] * h, axis=-1) * inv_sqrt

    # attention_output = bmm(scores, history)                 -> (TILE_BN, 2H)
    # Sublane reduction over T-1 on the XLU.
    att = jnp.sum(scores[:, :, None] * h, axis=1)

    # fnn Linear(4H -> H) without the concat: split weight into W_p / W_a.
    # Two (TILE_BN, 2H) @ (2H, H) MXU matmuls with a real M dimension.
    y = jnp.dot(p, wp_ref[...], preferred_element_type=jnp.float32)
    y = y + jnp.dot(att, wa_ref[...], preferred_element_type=jnp.float32)
    y = y + b_ref[...]

    # LeakyReLU(negative_slope=0.01)
    y = jnp.where(y > 0, y, 0.01 * y)

    # LayerNorm(H, eps=1e-5)
    mean = jnp.mean(y, axis=-1, keepdims=True)
    var = jnp.mean((y - mean) ** 2, axis=-1, keepdims=True)
    y = (y - mean) * jax.lax.rsqrt(var + 1e-5)
    y = y * gamma_ref[...] + beta_ref[...]

    out_ref[...] = y.astype(out_ref.dtype)
    scores_ref[...] = scores.astype(scores_ref.dtype)


def _choose_tile_bn(bn, tm1, two_h, h):
    """Largest multiple-of-8 row tile that keeps double-buffered tiles well
    under the default scoped-VMEM limit (headroom for weights + scratch)."""
    bytes_per_row = 4 * (two_h + tm1 * two_h + h + tm1)   # p + history + out + scores
    budget = 8 * 1024 * 1024                               # per-buffer budget (x2 for double buffering)
    max_rows = max(8, budget // max(bytes_per_row, 1))
    tile = min(1024, max_rows)
    tile = max(8, (tile // 8) * 8)
    if bn <= tile:                                         # tiny problems: one step
        tile = max(8, ((bn + 7) // 8) * 8)
    return tile


def temporal_attention(present, history, w_t, b, gamma, beta):
    """present: (BN,1,2H), history: (BN,T-1,2H), w_t: (4H,H), b/gamma/beta: (1,H).

    Returns attn_out (BN, H) and scores (BN, 1, T-1)."""
    BN, _, two_h = present.shape
    _, tm1, _ = history.shape
    H = w_t.shape[1]

    p2d = present.reshape(BN, two_h)

    tile_bn = _choose_tile_bn(BN, tm1, two_h, H)
    bn_pad = ((BN + tile_bn - 1) // tile_bn) * tile_bn
    if bn_pad != BN:
        p2d = jnp.pad(p2d, ((0, bn_pad - BN), (0, 0)))
        history_p = jnp.pad(history, ((0, bn_pad - BN), (0, 0), (0, 0)))
    else:
        history_p = history

    # Split the pre-transposed Linear weight so no concat is needed in-kernel.
    w_p = w_t[:two_h]   # (2H, H)
    w_a = w_t[two_h:]   # (2H, H)

    grid = (bn_pad // tile_bn,)
    grid_spec = pltpu.PrefetchScalarGridSpec(
        num_scalar_prefetch=0,
        grid=grid,
        in_specs=[
            pl.BlockSpec((tile_bn, two_h), lambda i: (i, 0)),          # present
            pl.BlockSpec((tile_bn, tm1, two_h), lambda i: (i, 0, 0)),  # history
            pl.BlockSpec((two_h, H), lambda i: (0, 0)),                # W_p (resident)
            pl.BlockSpec((two_h, H), lambda i: (0, 0)),                # W_a (resident)
            pl.BlockSpec((1, H), lambda i: (0, 0)),                    # bias
            pl.BlockSpec((1, H), lambda i: (0, 0)),                    # ln gamma
            pl.BlockSpec((1, H), lambda i: (0, 0)),                    # ln beta
        ],
        out_specs=[
            pl.BlockSpec((tile_bn, H), lambda i: (i, 0)),              # attn out
            pl.BlockSpec((tile_bn, tm1), lambda i: (i, 0)),            # scores
        ],
    )
    out, scores = pl.pallas_call(
        temporal_attention_kernel,
        out_shape=(
            jax.ShapeDtypeStruct((bn_pad, H), jnp.float32),
            jax.ShapeDtypeStruct((bn_pad, tm1), jnp.float32),
        ),
        grid_spec=grid_spec,
        compiler_params=pltpu.CompilerParams(
            dimension_semantics=("parallel",)),
    )(p2d, history_p, w_p, w_a, b, gamma, beta)

    return out[:BN], scores[:BN].reshape(BN, 1, tm1)


def reference(present, history, w, b, gamma, beta, B, N, H):
    """Pure-JAX reference matching the PyTorch forward."""
    scores = jnp.einsum("bie,bje->bij", present, history) / jnp.sqrt(
        jnp.float32(present.shape[-1]))
    att = jnp.einsum("bij,bje->bie", scores, history)
    cat = jnp.concatenate([present, att], axis=-1).reshape(B, N, 4 * H)
    y = cat @ w.T + b
    y = jnp.where(y > 0, y, 0.01 * y)
    mean = y.mean(-1, keepdims=True)
    var = ((y - mean) ** 2).mean(-1, keepdims=True)
    y = (y - mean) / jnp.sqrt(var + 1e-5) * gamma + beta
    return y, scores


if __name__ == "__main__":
    B, N, T, H = 2, 4, 9, 32          # batch, asset_num, seq, hidden_dim
    two_h = 2 * H
    BN = B * N

    key = jax.random.PRNGKey(0)
    k1, k2, k3, k4 = jax.random.split(key, 4)

    present = jax.random.normal(k1, (BN, 1, two_h), jnp.float32)
    history = jax.random.normal(k2, (BN, T - 1, two_h), jnp.float32)

    # nn.Linear(4H, H): weight (H, 4H), bias (H,) — deterministic uniform init.
    bound = 1.0 / math.sqrt(4 * H)
    w = jax.random.uniform(k3, (H, 4 * H), jnp.float32, -bound, bound)
    b = jax.random.uniform(k4, (H,), jnp.float32, -bound, bound)
    # nn.LayerNorm(H): gamma = 1, beta = 0.
    gamma = jnp.ones((H,), jnp.float32)
    beta = jnp.zeros((H,), jnp.float32)

    attn_out, scores = temporal_attention(
        present, history, w.T, b.reshape(1, H),
        gamma.reshape(1, H), beta.reshape(1, H))
    attn_out = attn_out.reshape(B, N, H)
    jax.block_until_ready((attn_out, scores))

    ref_out, ref_scores = reference(present, history, w, b, gamma, beta, B, N, H)
    np.testing.assert_allclose(np.asarray(attn_out), np.asarray(ref_out),
                               rtol=1e-4, atol=1e-4)
    np.testing.assert_allclose(np.asarray(scores), np.asarray(ref_scores),
                               rtol=1e-4, atol=1e-4)
    print("KERNEL_OK")
</pallas_src>

<mosaic_0001>
module attributes {stable_mosaic.version = 11 : i64} {
  func.func @temporal_attention_kernel(%arg0: i32, %arg1: memref<8x64xf32, #tpu.memory_space<vmem>>, %arg2: memref<8x8x64xf32, #tpu.memory_space<vmem>>, %arg3: memref<64x32xf32, #tpu.memory_space<vmem>>, %arg4: memref<64x32xf32, #tpu.memory_space<vmem>>, %arg5: memref<1x32xf32, #tpu.memory_space<vmem>>, %arg6: memref<1x32xf32, #tpu.memory_space<vmem>>, %arg7: memref<1x32xf32, #tpu.memory_space<vmem>>, %arg8: memref<8x32xf32, #tpu.memory_space<vmem>>, %arg9: memref<8x8xf32, #tpu.memory_space<vmem>>) attributes {dimension_semantics = [#tpu.dimension_semantics<parallel>], iteration_bounds = array<i64: 1>, scalar_prefetch = 0 : i64, scratch_operands = 0 : i64, tpu.core_type = #tpu.core_type<tc>, window_params = [{transform_indices = @transform_0, window_bounds = array<i64: 8, 64>}, {transform_indices = @transform_1, window_bounds = array<i64: 8, 8, 64>}, {pipeline_mode = #tpu.pipeline_mode<synchronous>, transform_indices = @transform_2, window_bounds = array<i64: 64, 32>}, {pipeline_mode = #tpu.pipeline_mode<synchronous>, transform_indices = @transform_3, window_bounds = array<i64: 64, 32>}, {pipeline_mode = #tpu.pipeline_mode<synchronous>, transform_indices = @transform_4, window_bounds = array<i64: 1, 32>}, {pipeline_mode = #tpu.pipeline_mode<synchronous>, transform_indices = @transform_5, window_bounds = array<i64: 1, 32>}, {pipeline_mode = #tpu.pipeline_mode<synchronous>, transform_indices = @transform_6, window_bounds = array<i64: 1, 32>}, {transform_indices = @transform_7, window_bounds = array<i64: 8, 32>}, {transform_indices = @transform_8, window_bounds = array<i64: 8, 8>}]} {
    %c0 = arith.constant 0 : index
    %c0_0 = arith.constant 0 : index
    %0 = vector.load %arg1[%c0, %c0_0] : memref<8x64xf32, #tpu.memory_space<vmem>>, vector<8x64xf32>
    %c0_1 = arith.constant 0 : index
    %c0_2 = arith.constant 0 : index
    %c0_3 = arith.constant 0 : index
    %1 = vector.load %arg2[%c0_1, %c0_2, %c0_3] : memref<8x8x64xf32, #tpu.memory_space<vmem>>, vector<8x8x64xf32>
    %2 = vector.shape_cast %0 : vector<8x64xf32> to vector<8x1x64xf32>
    %3 = vector.broadcast %2 : vector<8x1x64xf32> to vector<8x8x64xf32>
    %4 = arith.mulf %3, %1 : vector<8x8x64xf32>
    %cst = arith.constant dense<0.000000e+00> : vector<8x8xf32>
    %5 = vector.multi_reduction <add>, %4, %cst [2] : vector<8x8x64xf32> to vector<8x8xf32>
    %cst_4 = arith.constant 1.250000e-01 : f32
    %6 = vector.broadcast %cst_4 : f32 to vector<8x8xf32>
    %7 = arith.mulf %5, %6 : vector<8x8xf32>
    %8 = vector.shape_cast %7 : vector<8x8xf32> to vector<8x8x1xf32>
    %9 = vector.broadcast %8 : vector<8x8x1xf32> to vector<8x8x64xf32>
    %10 = arith.mulf %9, %1 : vector<8x8x64xf32>
    %cst_5 = arith.constant dense<0.000000e+00> : vector<8x64xf32>
    %11 = vector.multi_reduction <add>, %10, %cst_5 [1] : vector<8x8x64xf32> to vector<8x64xf32>
    %c0_6 = arith.constant 0 : index
    %c0_7 = arith.constant 0 : index
    %12 = vector.load %arg3[%c0_6, %c0_7] : memref<64x32xf32, #tpu.memory_space<vmem>>, vector<64x32xf32>
    %cst_8 = arith.constant dense<0.000000e+00> : vector<8x32xf32>
    %13 = tpu.matmul %0, %12, %cst_8 {dimension_numbers = #tpu.dot_dimension_numbers<[1], [0], [0], [1], [0, 0, 1, 1], [], []>} : vector<8x64xf32>, vector<64x32xf32>, vector<8x32xf32> -> vector<8x32xf32>
    %c0_9 = arith.constant 0 : index
    %c0_10 = arith.constant 0 : index
    %14 = vector.load %arg4[%c0_9, %c0_10] : memref<64x32xf32, #tpu.memory_space<vmem>>, vector<64x32xf32>
    %cst_11 = arith.constant dense<0.000000e+00> : vector<8x32xf32>
    %15 = tpu.matmul %11, %14, %cst_11 {dimension_numbers = #tpu.dot_dimension_numbers<[1], [0], [0], [1], [0, 0, 1, 1], [], []>} : vector<8x64xf32>, vector<64x32xf32>, vector<8x32xf32> -> vector<8x32xf32>
    %16 = arith.addf %13, %15 : vector<8x32xf32>
    %c0_12 = arith.constant 0 : index
    %c0_13 = arith.constant 0 : index
    %17 = vector.load %arg5[%c0_12, %c0_13] : memref<1x32xf32, #tpu.memory_space<vmem>>, vector<1x32xf32>
    %18 = vector.broadcast %17 : vector<1x32xf32> to vector<8x32xf32>
    %19 = arith.addf %16, %18 : vector<8x32xf32>
    %cst_14 = arith.constant 0.000000e+00 : f32
    %20 = vector.broadcast %cst_14 : f32 to vector<8x32xf32>
    %21 = arith.cmpf ogt, %19, %20 : vector<8x32xf32>
    %cst_15 = arith.constant 0.00999999977 : f32
    %22 = vector.broadcast %cst_15 : f32 to vector<8x32xf32>
    %23 = arith.mulf %22, %19 : vector<8x32xf32>
    %24 = arith.select %21, %19, %23 : vector<8x32xi1>, vector<8x32xf32>
    %cst_16 = arith.constant dense<0.000000e+00> : vector<8xf32>
    %25 = vector.multi_reduction <add>, %24, %cst_16 [1] : vector<8x32xf32> to vector<8xf32>
    %26 = vector.shape_cast %25 : vector<8xf32> to vector<8x1xf32>
    %cst_17 = arith.constant 3.200000e+01 : f32
    %27 = vector.broadcast %cst_17 : f32 to vector<8x1xf32>
    %28 = arith.divf %26, %27 : vector<8x1xf32>
    %29 = vector.broadcast %28 : vector<8x1xf32> to vector<8x32xf32>
    %30 = arith.subf %24, %29 : vector<8x32xf32>
    %31 = arith.mulf %30, %30 : vector<8x32xf32>
    %cst_18 = arith.constant dense<0.000000e+00> : vector<8xf32>
    %32 = vector.multi_reduction <add>, %31, %cst_18 [1] : vector<8x32xf32> to vector<8xf32>
    %33 = vector.shape_cast %32 : vector<8xf32> to vector<8x1xf32>
    %cst_19 = arith.constant 3.200000e+01 : f32
    %34 = vector.broadcast %cst_19 : f32 to vector<8x1xf32>
    %35 = arith.divf %33, %34 : vector<8x1xf32>
    %36 = vector.broadcast %28 : vector<8x1xf32> to vector<8x32xf32>
    %37 = arith.subf %24, %36 : vector<8x32xf32>
    %cst_20 = arith.constant 9.99999974E-6 : f32
    %38 = vector.broadcast %cst_20 : f32 to vector<8x1xf32>
    %39 = arith.addf %35, %38 : vector<8x1xf32>
    %40 = math.rsqrt %39 : vector<8x1xf32>
    %41 = vector.broadcast %40 : vector<8x1xf32> to vector<8x32xf32>
    %42 = arith.mulf %37, %41 : vector<8x32xf32>
    %c0_21 = arith.constant 0 : index
    %c0_22 = arith.constant 0 : index
    %43 = vector.load %arg6[%c0_21, %c0_22] : memref<1x32xf32, #tpu.memory_space<vmem>>, vector<1x32xf32>
    %44 = vector.broadcast %43 : vector<1x32xf32> to vector<8x32xf32>
    %45 = arith.mulf %42, %44 : vector<8x32xf32>
    %c0_23 = arith.constant 0 : index
    %c0_24 = arith.constant 0 : index
    %46 = vector.load %arg7[%c0_23, %c0_24] : memref<1x32xf32, #tpu.memory_space<vmem>>, vector<1x32xf32>
    %47 = vector.broadcast %46 : vector<1x32xf32> to vector<8x32xf32>
    %48 = arith.addf %45, %47 : vector<8x32xf32>
    %c0_25 = arith.constant 0 : index
    %c0_26 = arith.constant 0 : index
    %49 = vector.load %arg8[%c0_25, %c0_26] : memref<8x32xf32, #tpu.memory_space<vmem>>, vector<8x32xf32>
    tpu.vector_store %arg8[%c0_25, %c0_26], %48 {strides = array<i32>} : memref<8x32xf32, #tpu.memory_space<vmem>>, vector<8x32xf32>,
    %c0_27 = arith.constant 0 : index
    %c0_28 = arith.constant 0 : index
    %50 = vector.load %arg9[%c0_27, %c0_28] : memref<8x8xf32, #tpu.memory_space<vmem>>, vector<8x8xf32>
    tpu.vector_store %arg9[%c0_27, %c0_28], %7 {strides = array<i32>} : memref<8x8xf32, #tpu.memory_space<vmem>>, vector<8x8xf32>,
    return
  }
  func.func @transform_0(%arg0: i32) -> (i32, i32) {
    %c0_i32 = arith.constant 0 : i32
    %c0_i32_0 = arith.constant 0 : i32
    return %arg0, %c0_i32 : i32, i32
  }
  func.func @transform_1(%arg0: i32) -> (i32, i32, i32) {
    %c0_i32 = arith.constant 0 : i32
    %c0_i32_0 = arith.constant 0 : i32
    %c0_i32_1 = arith.constant 0 : i32
    return %arg0, %c0_i32, %c0_i32_0 : i32, i32, i32
  }
  func.func @transform_2(%arg0: i32) -> (i32, i32) {
    %c0_i32 = arith.constant 0 : i32
    %c0_i32_0 = arith.constant 0 : i32
    %c0_i32_1 = arith.constant 0 : i32
    return %c0_i32, %c0_i32_0 : i32, i32
  }
  func.func @transform_3(%arg0: i32) -> (i32, i32) {
    %c0_i32 = arith.constant 0 : i32
    %c0_i32_0 = arith.constant 0 : i32
    %c0_i32_1 = arith.constant 0 : i32
    return %c0_i32, %c0_i32_0 : i32, i32
  }
  func.func @transform_4(%arg0: i32) -> (i32, i32) {
    %c0_i32 = arith.constant 0 : i32
    %c0_i32_0 = arith.constant 0 : i32
    %c0_i32_1 = arith.constant 0 : i32
    return %c0_i32, %c0_i32_0 : i32, i32
  }
  func.func @transform_5(%arg0: i32) -> (i32, i32) {
    %c0_i32 = arith.constant 0 : i32
    %c0_i32_0 = arith.constant 0 : i32
    %c0_i32_1 = arith.constant 0 : i32
    return %c0_i32, %c0_i32_0 : i32, i32
  }
  func.func @transform_6(%arg0: i32) -> (i32, i32) {
    %c0_i32 = arith.constant 0 : i32
    %c0_i32_0 = arith.constant 0 : i32
    %c0_i32_1 = arith.constant 0 : i32
    return %c0_i32, %c0_i32_0 : i32, i32
  }
  func.func @transform_7(%arg0: i32) -> (i32, i32) {
    %c0_i32 = arith.constant 0 : i32
    %c0_i32_0 = arith.constant 0 : i32
    return %arg0, %c0_i32 : i32, i32
  }
  func.func @transform_8(%arg0: i32) -> (i32, i32) {
    %c0_i32 = arith.constant 0 : i32
    %c0_i32_0 = arith.constant 0 : i32
    return %arg0, %c0_i32 : i32, i32
  }
}

</mosaic_0001>

<bundles_post_ra>
// kernel: tpu_custom_call.1
= control target key start
LH: loop header
LB: loop body
LE: loop exit
PB: predicated region body
PF: predicated region fallthrough
CT: control target
= control target key end

     0   :  { %14 = vsyncpa [#allocation3], 0  ;;  %v44_v0 = vlaneseq  ;;  %v681_v1 = vmov 1966171168   ;;  %s923_s0 = inlined_call_operand.vmem [shape: f32[8,64], index: 0, kind: input, shape index: {}]   ;;  %s924_s1 = inlined_call_operand.vmem [shape: f32[8,8,64], index: 1, kind: input, shape index: {}]   ;;  %s925_s2 = inlined_call_operand.vmem [shape: f32[64,32], index: 2, kind: input, shape index: {}]   ;;  %s926_s3 = inlined_call_operand.vmem [shape: f32[64,32], index: 3, kind: input, shape index: {}]   ;;  %s927_s4 = inlined_call_operand.vmem [shape: f32[1,32], index: 4, kind: input, shape index: {}]   ;;  %s928_s5 = inlined_call_operand.vmem [shape: f32[1,32], index: 5, kind: input, shape index: {}]   ;;  %s929_s6 = inlined_call_operand.vmem [shape: f32[1,32], index: 6, kind: input, shape index: {}]   ;;  %s930_s7 = inlined_call_operand.hbm [shape: f32[8,32], index: 7, kind: output, shape index: {0}]   ;;  %s931_s8 = inlined_call_operand.hbm [shape: f32[8,8], index: 8, kind: output, shape index: {1}]  }
   0x1   :  { %v42_v2 = vunpack.c.l.s4 %v681_v1  ;;  %v735_v3 = vld [vmem:[%s923_s0] sm:$0xff] }
   0x2   :  { %v45_v4 = vshrl.u32 %v44_v0, 7  ;;  %v468_v5 = vand.u32 127, %v44_v0  ;;  %v40_v7 = vcombine.high %v735_v3, %v735_v3 }
   0x3   :  { %v43_v6 = vunpack.c.0.s8 %v42_v2 }
   0x4   :  { %15 = vsyncpa [#allocation5], 0  ;;  %v739_v8 = vsub.s32 %v468_v5, %v45_v4  ;;  %v91_v11 = vsub.s32 0, %v45_v4  ;;  %v745_v17 = vld [vmem:[%s924_s1] sm:$0xff]  ;;  %vm137_vm0 = vcmask 523264   ;;  %v750_v22 = vld [vmem:[%s924_s1 + $0x10] sm:$0xff] }
   0x5   :  { %v46_v9 = vsub.s32 %v43_v6, %v45_v4  ;;  %v755_v23 = vld [vmem:[%s924_s1 + $0x8] sm:$0xff]  ;;  %v766_v31 = vld [vmem:[%s924_s1 + $0x20] sm:$0xff]  ;;  %v775_v38 = vld [vmem:[%s924_s1 + $0x18] sm:$0xff]  ;;  %v682_v60 = vmov 0.0|0.0   ;;  %vm683_vm1 = vmmov 0   ;;  %vm258_vm2 = vcmask 1041409  }
   0x6   :  { %v760_v24 = vld [vmem:[%s924_s1 + $0x28] sm:$0xff]  ;;  %v783_v44 = vld [vmem:[%s924_s1 + $0x30] sm:$0xff]  ;;  %v790_v48 = vld [vmem:[%s924_s1 + $0x38] sm:$0xff]  ;;  %612 = vmatprep.subr.bf16.mxu1 %v682_v60  ;;  %600 = vmatprep.subr.bf16.mxu0 %v682_v60  ;;  %vm260_vm3 = vcmask 1042434   ;;  %vm262_vm4 = vcmask 1043459   ;;  %vm264_vm5 = vcmask 1044484  }
   0x7   :  { %v47_v10 = vrot.slane %v735_v3, %v46_v9  ;;  %v54_v12 = vrot.slane %v40_v7, %v46_v9  ;;  %v234_v55 = vld [vmem:[%s925_s2] sm:$0xff]  ;;  %v235_v56 = vld [vmem:[%s925_s2 + $0x8] sm:$0xff]  ;;  %v236_v62 = vld [vmem:[%s925_s2 + $0x10] sm:$0xff]  ;;  %vm266_vm6 = vcmask 1045509   ;;  %vm268_vm7 = vcmask 1046534   ;;  %s685_s0 = smov [#allocation4]  }
   0x8   :  { %v613_v57 = vpack.c.bf16 %v235_v56, %v234_v55  ;;  %v242_v58 = vld [vmem:[%s926_s3] sm:$0xff]  ;;  %v243_v59 = vld [vmem:[%s926_s3 + $0x8] sm:$0xff]  ;;  %v237_v63 = vld [vmem:[%s925_s2 + $0x18] sm:$0xff]  ;;  %vm270_vm8 = vcmask 1047559   ;;  %vm509_vm9 = vcmask 64512   ;;  %vm427_vm11 = vcmask 261120  }
   0x9   :  { %v63_v13 = vrot.slane %v47_v10, %v46_v9  ;;  %v55_v14 = vcombine.high %v47_v10, %v47_v10  ;;  %v56_v15 = vcombine.high %v54_v12, %v54_v12  ;;  %v70_v16 = vrot.slane %v54_v12, %v46_v9  ;;  %v244_v1 = vld [vmem:[%s926_s3 + $0x10] sm:$0xff]  ;;  %v245_v2 = vld [vmem:[%s926_s3 + $0x18] sm:$0xff]  ;;  %v238_v5 = vld [vmem:[%s925_s2 + $0x20] sm:$0xff]  ;;  %s527_s29 = sshll.u32 %s685_s0, 4  ;;  %s528_s29 = int_to_ptr.vmem [resolvable:$true] %s527_s29 }
   0xa   :  { %v601_v61 = vpack.c.bf16 %v243_v59, %v242_v58  ;;  %614 = vmatpush3.bf16.msra.mxu1 %v613_v57  ;;  %v616_v0 = vpack.c.bf16 %v237_v63, %v236_v62  ;;  %v604_v4 = vpack.c.bf16 %v245_v2, %v244_v1  ;;  %v239_v6 = vld [vmem:[%s925_s2 + $0x28] sm:$0xff]  ;;  %v240_v12 = vld [vmem:[%s925_s2 + $0x30] sm:$0xff]  ;;  %p638_p1 = scmp.lt.s32.totalorder %s528_s29, %s528_s29 }
   0xb   :  { %v92_v18 = vrot.slane %v63_v13, %v91_v11  ;;  %v85_v19 = vcombine.high %v63_v13, %v63_v13  ;;  %v77_v20 = vrot.slane %v55_v14, %v46_v9  ;;  %v84_v21 = vrot.slane %v56_v15, %v46_v9  ;;  %615 = vmatprep.subr.bf16.mxu1 %v682_v60  ;;  %v246_v9 = vld [vmem:[%s926_s3 + $0x20] sm:$0xff]  ;;  %v247_v10 = vld [vmem:[%s926_s3 + $0x28] sm:$0xff]  ;;  %v241_v13 = vld [vmem:[%s925_s2 + $0x38] sm:$0xff] }
   0xc   :  { %v108_v25 = vrot.slane %v70_v16, %v91_v11  ;;  %v86_v26 = vcombine.high %v70_v16, %v70_v16  ;;  %602 = vmatpush3.bf16.msra.mxu0 %v601_v61  ;;  %v619_v7 = vpack.c.bf16 %v239_v6, %v238_v5  ;;  %v622_v14 = vpack.c.bf16 %v241_v13, %v240_v12  ;;  %v248_v15 = vld [vmem:[%s926_s3 + $0x30] sm:$0xff]  ;;  %v249_v16 = vld [vmem:[%s926_s3 + $0x38] sm:$0xff] }
   0xd   :  { %v129_v27 = vmul.f32 %v92_v18, %v745_v17  ;;  %v100_v28 = vrot.slane %v85_v19, %v91_v11  ;;  %v96_v29 = vrot.slane %v77_v20, %v91_v11  ;;  %v112_v30 = vrot.slane %v84_v21, %v91_v11  ;;  %603 = vmatprep.subr.bf16.mxu0 %v682_v60 }
   0xe   :  { %v87_v32 = vcombine.high %v77_v20, %v77_v20  ;;  %v88_v33 = vcombine.high %v84_v21, %v84_v21  ;;  %v133_v42 = vmul.f32 %v108_v25, %v766_v31  ;;  %v116_v43 = vrot.slane %v86_v26, %v91_v11  ;;  %617 = vmatpush3.bf16.msra.mxu1 %v616_v0 }
   0xf   :  { %v138_v34 = vsel %vm137_vm0, %v129_v27, 0.0  ;;  %v131_v35 = vmul.f32 %v100_v28, %v750_v22  ;;  %v130_v36 = vmul.f32 %v96_v29, %v755_v23  ;;  %v134_v37 = vmul.f32 %v112_v30, %v760_v24  ;;  %618 = vmatprep.subr.bf16.mxu1 %v682_v60 }
  0x10   :  { %139 = vadd.xlane.f32.xlu0 %v138_v34  ;;  %v104_v39 = vrot.slane %v87_v32, %v91_v11  ;;  %v120_v47 = vrot.slane %v88_v33, %v91_v11  ;;  %v150_v49 = vsel %vm137_vm0, %v133_v42, 0.0  ;;  %v135_v50 = vmul.f32 %v116_v43, %v783_v44  ;;  %605 = vmatpush3.bf16.msra.mxu0 %v604_v4 }
  0x11   :  { %v144_v40 = vsel %vm137_vm0, %v131_v35, 0.0  ;;  %v141_v41 = vsel %vm137_vm0, %v130_v36, 0.0  ;;  %v153_v45 = vsel %vm137_vm0, %v134_v37, 0.0  ;;  %606 = vmatprep.subr.bf16.mxu0 %v682_v60  ;;  %v607_v11 = vpack.c.bf16 %v247_v10, %v246_v9 }
  0x12   :  { %145 = vadd.xlane.f32.xlu1 %v144_v40  ;;  %v132_v46 = vmul.f32 %v104_v39, %v775_v38  ;;  %v136_v52 = vmul.f32 %v120_v47, %v790_v48  ;;  %v156_v53 = vsel %vm137_vm0, %v135_v50, 0.0  ;;  %620 = vmatpush3.bf16.msra.mxu1 %v619_v7  ;;  %v610_v18 = vpack.c.bf16 %v249_v16, %v248_v15 }
  0x13   :  { %621 = vmatprep.subr.bf16.mxu1 %v682_v60  ;;  %v684_v19 = vmov 0.0  }
  0x14   :  { %142 = vadd.xlane.f32.xlu0 %v141_v41  ;;  %v147_v51 = vsel %vm137_vm0, %v132_v46, 0.0  ;;  %v159_v54 = vsel %vm137_vm0, %v136_v52, 0.0  ;;  %608 = vmatpush3.bf16.msra.mxu0 %v607_v11 }
  0x15   :  { %609 = vmatprep.subr.bf16.mxu0 %v682_v60  ;;  %597 = vmatprep.mubr.msk.f32.mxu1 %vm683_vm1, %v684_v19 }
  0x16   :  { %154 = vadd.xlane.f32.xlu1 %v153_v45  ;;  %623 = vmatpush3.bf16.msra.mxu1 %v622_v14 }
  0x17   :  { %578 = vmatprep.mubr.msk.f32.mxu0 %vm683_vm1, %v684_v19 }
  0x18   :  { %151 = vadd.xlane.f32.xlu0 %v150_v49  ;;  %611 = vmatpush3.bf16.msra.mxu0 %v610_v18 }
  0x19   :  { %598 = vmatmul.mubr.msk.f32.vlgmr.msra.gmra.mrb[0].mxu1 %vm137_vm0, %v735_v3 }
  0x1a   :  { %148 = vadd.xlane.f32.xlu1 %v147_v51 }
  0x1c   :  { %157 = vadd.xlane.f32.xlu0 %v156_v53 }
  0x1e   :  { %160 = vadd.xlane.f32.xlu1 %v159_v54 }
  0x9d   :  { %v140_v20 = vpop.xlane.xlu0 %139 }
  0x9e   :  { %v162_v21 = vmul.f32 0.125, %v140_v20 }
  0x9f   :  { %v146_v25 = vpop.xlane.xlu1 %145 }
  0xa0   :  { %v170_v26 = vmul.f32 %v162_v21, %v745_v17  ;;  %v164_v27 = vmul.f32 0.125, %v146_v25  ;;  %v472_v34 = vrot.slane %v162_v21, %v739_v8 }
  0xa1   :  { %v143_v28 = vpop.xlane.xlu0 %142 }
  0xa2   :  { %v178_v29 = vsel %vm137_vm0, %v170_v26, 0.0  ;;  %v172_v30 = vmul.f32 %v164_v27, %v750_v22  ;;  %v163_v32 = vmul.f32 0.125, %v143_v28  ;;  %v480_v22 = vrot.slane %v164_v27, %v739_v8 }
  0xa3   :  { %v179_v33 = vrot.slane %v178_v29, 4  ;;  %v155_v35 = vpop.xlane.xlu1 %154 }
  0xa4   :  { %v192_v36 = vsel %vm137_vm0, %v172_v30, 0.0  ;;  %v171_v3 = vmul.f32 %v163_v32, %v755_v23  ;;  %v476_v37 = vrot.slane %v163_v32, %v739_v8  ;;  %v167_v39 = vmul.f32 0.125, %v155_v35 }
  0xa5   :  { %v180_v17 = vadd.f32 %v179_v33, %v178_v29  ;;  %v193_v40 = vrot.slane %v192_v36, 4  ;;  %v152_v41 = vpop.xlane.xlu0 %151 }
  0xa6   :  { %v185_v42 = vsel %vm137_vm0, %v171_v3, 0.0  ;;  %v501_v43 = vsel %vm258_vm2, %v476_v37, %v472_v34  ;;  %v175_v45 = vmul.f32 %v167_v39, %v760_v24  ;;  %v166_v23 = vmul.f32 0.125, %v152_v41 }
  0xa7   :  { %v181_v46 = vrot.slane %v180_v17, 2  ;;  %v194_v47 = vadd.f32 %v193_v40, %v192_v36  ;;  %v186_v49 = vrot.slane %v185_v42, 4  ;;  %v149_v50 = vpop.xlane.xlu1 %148  ;;  %v502_v55 = vsel %vm260_vm3, %v480_v22, %v501_v43 }
  0xa8   :  { %v213_v51 = vsel %vm137_vm0, %v175_v45, 0.0  ;;  %v165_v52 = vmul.f32 0.125, %v149_v50  ;;  %v174_v58 = vmul.f32 %v166_v23, %v766_v31  ;;  %v488_v63 = vrot.slane %v166_v23, %v739_v8 }
  0xa9   :  { %v187_v53 = vadd.f32 %v186_v49, %v185_v42  ;;  %v214_v54 = vrot.slane %v213_v51, 4  ;;  %v158_v56 = vpop.xlane.xlu0 %157  ;;  %v182_v57 = vadd.f32 %v181_v46, %v180_v17  ;;  %v195_v60 = vrot.slane %v194_v47, 2 }
  0xaa   :  { %v173_v24 = vmul.f32 %v165_v52, %v775_v38  ;;  %v484_v59 = vrot.slane %v165_v52, %v739_v8  ;;  %v206_v0 = vsel %vm137_vm0, %v174_v58, 0.0  ;;  %v168_v4 = vmul.f32 0.125, %v158_v56 }
  0xab   :  { %v188_v61 = vrot.slane %v187_v53, 2  ;;  %v215_v62 = vadd.f32 %v214_v54, %v213_v51  ;;  %v492_v31 = vrot.slane %v167_v39, %v739_v8  ;;  %v161_v7 = vpop.xlane.xlu1 %160  ;;  %v207_v38 = vrot.slane %v206_v0, 4 }
  0xac   :  { %v199_v1 = vsel %vm137_vm0, %v173_v24, 0.0  ;;  %v503_v2 = vsel %vm262_vm4, %v484_v59, %v502_v55  ;;  %v176_v11 = vmul.f32 %v168_v4, %v783_v44  ;;  %v183_v12 = vrot.slane %v182_v57, 1 }
  0xad   :  { %v189_v5 = vadd.f32 %v188_v61, %v187_v53  ;;  %v216_v6 = vrot.slane %v215_v62, 2  ;;  %v200_v9 = vrot.slane %v199_v1, 4  ;;  %v504_v10 = vsel %vm264_vm5, %v488_v63, %v503_v2  ;;  %v541_v63 = vld [vmem:[%s927_s4] ss:$0 sm:$0xff]  ;;  %s633_s4 = scalar_lea.vmem %s528_s29, 128 }
  0xae   :  { %v196_v13 = vadd.f32 %v195_v60, %v194_v47  ;;  %v496_v15 = vrot.slane %v168_v4, %v739_v8  ;;  %v208_v16 = vadd.f32 %v207_v38, %v206_v0  ;;  %v220_v19 = vsel %vm137_vm0, %v176_v11, 0.0  ;;  %p634_p0 = scmp.ne.s32.totalorder %s528_s29, %s633_s4  ;;  %p639_p2 = scmp.lt.s32.totalorder %s633_s4, %s633_s4 }
  0xaf   :  { %v190_v14 = vrot.slane %v189_v5, 1  ;;  %v201_v18 = vadd.f32 %v200_v9, %v199_v1  ;;  %v169_v20 = vmul.f32 0.125, %v161_v7  ;;  %v217_v25 = vadd.f32 %v216_v6, %v215_v62 }
  0xb0   :  { %v221_v26 = vrot.slane %v220_v19, 4  ;;  %v505_v27 = vsel %vm266_vm6, %v492_v31, %v504_v10  ;;  %v209_v28 = vrot.slane %v208_v16, 2  ;;  %v197_v32 = vrot.slane %v196_v13, 1  ;;  %p640_p3 = por %p639_p2, %p638_p1 }
  0xb1   :  { %v191_v21 = vadd.f32 %v190_v14, %v189_v5  ;;  %v202_v29 = vrot.slane %v201_v18, 2  ;;  %v177_v30 = vmul.f32 %v169_v20, %v790_v48  ;;  %v500_v44 = vrot.slane %v169_v20, %v739_v8 }
  0xb2   :  { %v222_v33 = vadd.f32 %v221_v26, %v220_v19  ;;  %v506_v34 = vsel %vm268_vm7, %v496_v15, %v505_v27  ;;  %v184_v35 = vadd.f32 %v183_v12, %v182_v57  ;;  %v210_v36 = vadd.f32 %v209_v28, %v208_v16  ;;  %p641_p4 = pnand %p640_p3, %p634_p0 }
  0xb3   :  { %v203_v3 = vadd.f32 %v202_v29, %v201_v18  ;;  %v227_v37 = vsel %vm137_vm0, %v177_v30, 0.0  ;;  %v507_v40 = vsel %vm270_vm8, %v500_v44, %v506_v34  ;;  %v218_v22 = vrot.slane %v217_v25, 1 }
  0xb4   :  { %v223_v39 = vrot.slane %v222_v33, 2  ;;  %v228_v17 = vrot.slane %v227_v37, 4  ;;  %v259_v41 = vsel %vm258_vm2, %v191_v21, %v184_v35  ;;  %v211_v48 = vrot.slane %v210_v36, 1  ;;  %510 = vst.msk [vmem:[#allocation4] sm:$0xff] %vm509_vm9, %v507_v40 }
  0xb5   :  { %v204_v42 = vrot.slane %v203_v3, 1  ;;  %v198_v8 = vadd.f32 %v197_v32, %v196_v13  ;;  %v219_v51 = vadd.f32 %v218_v22, %v217_v25 }
  0xb6   :  { %v224_v43 = vadd.f32 %v223_v39, %v222_v33  ;;  %v229_v45 = vadd.f32 %v228_v17, %v227_v37  ;;  %v212_v47 = vadd.f32 %v211_v48, %v210_v36 }
  0xb7   :  { %v205_v46 = vadd.f32 %v204_v42, %v203_v3  ;;  %v261_v49 = vsel %vm260_vm3, %v198_v8, %v259_v41 }
  0xb8   :  { %v225_v23 = vrot.slane %v224_v43, 1  ;;  %v230_v50 = vrot.slane %v229_v45, 2 }
  0xb9   :  { %v263_v52 = vsel %vm262_vm4, %v205_v46, %v261_v49 }
  0xba   :  { %v226_v53 = vadd.f32 %v225_v23, %v224_v43  ;;  %v231_v54 = vadd.f32 %v230_v50, %v229_v45  ;;  %v265_v55 = vsel %vm264_vm5, %v212_v47, %v263_v52 }
  0xbb   :  { %v267_v56 = vsel %vm266_vm6, %v219_v51, %v265_v55 }
  0xbc   :  { %v232_v57 = vrot.slane %v231_v54, 1  ;;  %v269_v58 = vsel %vm268_vm7, %v226_v53, %v267_v56 }
  0xbe   :  { %v233_v24 = vadd.f32 %v232_v57, %v231_v54 }
  0xc0   :  { %v271_v59 = vsel %vm270_vm8, %v233_v24, %v269_v58 }
  0xc1   :  { %579 = vmatmul.mubr.msk.f32.vlgmr.msra.gmra.mrb[0].mxu0 %vm137_vm0, %v271_v59 }
  0xec   :  { %v412_v60 = vpop.f32.mrb[0].mxu1 }
  0xed   :  { %v599_v61 = vpop.f32.mrb[1].mxu1 }
 0x194   :  { %v340_v62 = vpop.f32.mrb[0].mxu0 }
 0x195   :  { %v413_v0 = vadd.f32 %v412_v60, %v340_v62  ;;  %v580_v1 = vpop.f32.mrb[1].mxu0 }
 0x197   :  { %v423_v2 = vadd.f32 %v541_v63, %v413_v0 }
 0x199   :  { %vm424_vm10 = vcmp.gt.f32.partialorder %v423_v2, 0.0  ;;  %v425_v4 = vmul.f32 0.01, %v423_v2 }
 0x19b   :  { %v426_v5 = vsel %vm424_vm10, %v423_v2, %v425_v4 }
 0x19c   :  { %v428_v6 = vsel %vm427_vm11, %v426_v5, 0.0 }
 0x19d   :  { %429 = vadd.xlane.f32.xlu0 %v428_v6 }
 0x22a   :  { %v430_v31 = vpop.xlane.xlu0 %429 }
 0x22b   :  { %v432_v7 = vmul.f32 0.03125, %v430_v31 }
 0x22d   :  { %v433_v38 = vsub.f32 %v426_v5, %v432_v7 }
 0x22f   :  { %v434_v9 = vmul.f32 %v433_v38, %v433_v38 }
 0x231   :  { %v435_v10 = vsel %vm427_vm11, %v434_v9, 0.0 }
 0x232   :  { %436 = vadd.xlane.f32.xlu1 %v435_v10 }
 0x233   :  { %644 = shalt.err (!%p641_p4)
}
 0x234   :  { %s645_s10 = scalar_lea.hbm %s931_s8, 128 }
 0x235   :  { %p646_p5 = scmp.ne.s32.totalorder %s931_s8, %s645_s10  ;;  %p649_p6 = scmp.lt.u32.totalorder %s645_s10, %s931_s8 }
 0x237   :  { %p651_p7 = pnand %p649_p6, %p646_p5 }
 0x239   :  { %654 = shalt.err (!%p651_p7)
}
 0x23a   :  { %530 = dma.vmem_to_hbm [thread:$0]  %s528_s29, 128, %s931_s8, [#allocation5]   ;;  %v542_v15 = vld [vmem:[%s928_s5] ss:$0 sm:$0xff] }
 0x23b   :  { %v543_v18 = vld [vmem:[%s929_s6] ss:$0 sm:$0xff]  ;;  %s686_s21 = smov [#allocation2]  }
 0x23c   :  { %s517_s22 = sshll.u32 %s686_s21, 4  ;;  %s518_s22 = int_to_ptr.vmem [resolvable:$true] %s517_s22 }
 0x23d   :  { %s655_s8 = scalar_lea.vmem %s518_s22, 128  ;;  %p660_p9 = scmp.lt.s32.totalorder %s518_s22, %s518_s22 }
 0x23e   :  { %p656_p8 = scmp.ne.s32.totalorder %s518_s22, %s655_s8  ;;  %p661_p10 = scmp.lt.s32.totalorder %s655_s8, %s655_s8 }
 0x240   :  { %p662_p11 = por %p661_p10, %p660_p9 }
 0x242   :  { %p663_p12 = pnand %p662_p11, %p656_p8 }
 0x2bf   :  { %v437_v11 = vpop.xlane.xlu1 %436 }
 0x2c0   :  { %v438_v12 = vmul.f32 0.03125, %v437_v11 }
 0x2c2   :  { %v439_v13 = vadd.f32 1e-05, %v438_v12 }
 0x2c4   :  { %631 = vrsqrt.f32 %v439_v13 }
 0x2ce   :  { %v632_v14 = vpop.eup %631 }
 0x2cf   :  { %v441_v16 = vmul.f32 %v632_v14, %v433_v38 }
 0x2d1   :  { %v449_v19 = vmul.f32 %v542_v15, %v441_v16 }
 0x2d3   :  { %v457_v20 = vadd.f32 %v543_v18, %v449_v19 }
 0x2d5   :  { %458 = vst.msk [vmem:[#allocation2] sm:$0xff] %vm427_vm11, %v457_v20 }
 0x2d6   :  { %666 = shalt.err (!%p663_p12)
}
 0x2d7   :  { %s667_s23 = scalar_lea.hbm %s930_s7, 128 }
 0x2d8   :  { %p668_p13 = scmp.ne.s32.totalorder %s930_s7, %s667_s23  ;;  %p671_p0 = scmp.lt.u32.totalorder %s667_s23, %s930_s7 }
 0x2da   :  { %p673_p1 = pnand %p671_p0, %p668_p13 }
 0x2dc   :  { %676 = shalt.err (!%p673_p1)
}
 0x2dd   :  { %520 = dma.vmem_to_hbm [thread:$0]  %s518_s22, 128, %s930_s7, [#allocation3]  }
 0x2de   :  { %677 = dma.done.wait [#allocation3], 128  }
 0x2df   :  { %678 = vsyncadd [#allocation3], 4294967168 }
 0x2e0   :  { %679 = dma.done.wait [#allocation5], 128  }
 0x2e1   :  { %680 = vsyncadd [#allocation5], 4294967168 }
 0x2e2   :  { %537 = vsyncpa [#allocation3], 1 }
 0x2e3   :  { %538 = vsyncpa [#allocation5], 1 }

</bundles_post_ra>
